<compile_context>
chip_gen: v6e
topology: v6e:2x2x1
jax: 0.10.0
libtpu: 0.0.40
codegen_flags: <defaults>
</compile_context>

<pallas_src>
import jax
import jax.numpy as jnp
from jax.experimental import pallas as pl
from jax.experimental.pallas import tpu as pltpu

EPS = 1e-5
PACK_W = 256                                  # lane width of the packed vector operand
N_RAW = 12                                    # raw input columns read by forward()
COL_SEL = (0, 1, 2, 3, 4, 5, 7, 9, 10, 11)    # columns kept by the torch.cat


def mlp_kernel(x_ref, vec_ref, w1_ref, w2_ref, w3_ref, w4_ref, out_ref):
    """Whole forward pass in one invocation.

    x_ref   : (B, 12)    raw input columns 0..11
    vec_ref : (16, 256)  packed rows: [g0, be0, g1, be1, g2, be2, g3, be3, b4, 0...]
    w1_ref  : (12, 256)  rows 6 and 8 are zero (dropped columns)
    w2_ref  : (256, 64)
    w3_ref  : (64, 32)
    w4_ref  : (32, 3)
    out_ref : (B, 3)
    """
    B = x_ref.shape[0]
    inv_b = 1.0 / B                                  # static python float
    ones_row = jnp.ones((1, B), jnp.float32)         # MXU reduction vector

    def col_sum(h):
        # Batch-axis reduction on the MXU (frees the VALU, which is the binding
        # slot of the BN/ReLU elementwise chain at large B).
        return jnp.dot(ones_row, h, preferred_element_type=jnp.float32)

    def bn_relu(z, grow, brow):
        # Training-mode BatchNorm1d folded into a single scale/shift FMA + ReLU.
        # One-pass stats (var = E[z^2] - mu^2, clamped) are safe here: z is a
        # post-BN/ReLU activation times U(+-1/sqrt(fan_in)) weights, so mean and
        # std are the same order of magnitude (no catastrophic cancellation).
        f = z.shape[1]
        gamma = vec_ref[grow:grow + 1, 0:f]
        beta = vec_ref[brow:brow + 1, 0:f]
        mu = col_sum(z) * inv_b
        var = jnp.maximum(col_sum(z * z) * inv_b - mu * mu, 0.0)
        scale = gamma * jax.lax.rsqrt(var + EPS)     # rsqrt -> EUP (free slot)
        shift = beta - mu * scale
        return jnp.maximum(z * scale + shift, 0.0)

    # ---- bn0 folded around the first matmul --------------------------------
    # Raw input features may have arbitrary mean/scale -> centered (two-pass)
    # statistics to avoid E[x^2]-mu^2 cancellation.
    x = x_ref[...].astype(jnp.float32)
    n_in = x.shape[1]
    g0 = vec_ref[0:1, 0:n_in]
    be0 = vec_ref[1:2, 0:n_in]
    mu0 = col_sum(x) * inv_b
    xc = x - mu0
    var0 = col_sum(xc * xc) * inv_b
    scale0 = g0 * jax.lax.rsqrt(var0 + EPS)
    # bn0(x) @ W1 == (xc * scale0) @ W1 + be0 @ W1 : only one (B, 12) multiply
    # touches activations; the beta term is a constant (1,12)@(12,256) MXU op.
    # Dropped columns 6/8 contribute nothing (their w1 rows are zero).
    xs = (xc * scale0).astype(w1_ref.dtype)
    bias1 = jnp.dot(be0.astype(w1_ref.dtype), w1_ref[...],
                    preferred_element_type=jnp.float32)

    # ---- layers 1..3: linear (bias absorbed by BN) -> bn -> relu ------------
    z1 = jnp.dot(xs, w1_ref[...], preferred_element_type=jnp.float32) + bias1
    h1 = bn_relu(z1, 2, 3)

    z2 = jnp.dot(h1.astype(w2_ref.dtype), w2_ref[...],
                 preferred_element_type=jnp.float32)
    h2 = bn_relu(z2, 4, 5)

    z3 = jnp.dot(h2.astype(w3_ref.dtype), w3_ref[...],
                 preferred_element_type=jnp.float32)
    h3 = bn_relu(z3, 6, 7)

    # ---- output head: narrow (B, 3) store; b4 applied (no BN after linear4) -
    b4 = vec_ref[8:9, 0:out_ref.shape[1]]
    out_ref[...] = (jnp.dot(h3.astype(w4_ref.dtype), w4_ref[...],
                            preferred_element_type=jnp.float32) + b4
                    ).astype(out_ref.dtype)


def init_params(key):
    """Deterministic PyTorch-like init: U(-1/sqrt(fan_in), 1/sqrt(fan_in))."""
    dims = [(10, 256), (256, 64), (64, 32), (32, 3)]
    params = {}
    for li, (fin, fout) in enumerate(dims, start=1):
        key, kw, kb = jax.random.split(key, 3)
        bound = 1.0 / jnp.sqrt(jnp.float32(fin))
        params[f"w{li}"] = jax.random.uniform(
            kw, (fin, fout), jnp.float32, -bound, bound
        )
        params[f"b{li}"] = jax.random.uniform(kb, (fout,), jnp.float32, -bound, bound)
    # BatchNorm affine params: gamma=1, beta=0 (PyTorch default init)
    for bi, nf in zip(range(4), [10, 256, 64, 32]):
        params[f"g{bi}"] = jnp.ones((nf,), jnp.float32)
        params[f"be{bi}"] = jnp.zeros((nf,), jnp.float32)
    # k0..k6 scalar parameters exist in __init__ but are unused in forward().
    return params


def _pad_row(v, width=PACK_W):
    v = jnp.asarray(v, jnp.float32)
    return jnp.zeros((width,), jnp.float32).at[: v.shape[0]].set(v)


def prepare_params(params, matmul_dtype=jnp.float32):
    """One-time packing of model parameters into kernel operands.

    Call once and reuse across forward calls so the per-call path is free of
    the ~10 tiny pad/stack XLA ops.
    """
    idx = jnp.asarray(COL_SEL, jnp.int32)

    # Absorb the torch.cat column selection into w1 / bn0 params.
    w1 = jnp.zeros((N_RAW, 256), jnp.float32).at[idx, :].set(
        params["w1"].astype(jnp.float32))
    g0 = jnp.ones((N_RAW,), jnp.float32).at[idx].set(params["g0"])
    be0 = jnp.zeros((N_RAW,), jnp.float32).at[idx].set(params["be0"])

    # b1..b3 are intentionally omitted: BN(xW + b) == BN(xW) in training mode.
    rows = [
        _pad_row(g0), _pad_row(be0),
        _pad_row(params["g1"]), _pad_row(params["be1"]),
        _pad_row(params["g2"]), _pad_row(params["be2"]),
        _pad_row(params["g3"]), _pad_row(params["be3"]),
        _pad_row(params["b4"]),
    ]
    rows += [jnp.zeros((PACK_W,), jnp.float32)] * (16 - len(rows))
    vecs = jnp.stack(rows)                       # (16, 256), stays f32

    return {
        "vecs": vecs,
        "w1": w1.astype(matmul_dtype),
        "w2": params["w2"].astype(matmul_dtype),
        "w3": params["w3"].astype(matmul_dtype),
        "w4": params["w4"].astype(matmul_dtype),
    }


def _vmem_limit_bytes(batch):
    # Rough live-VMEM estimate: ~6 KB/row of lane-padded f32 activations
    # (x, z1/h1 at 256 lanes, z2/h2, z3/h3, out) plus weights / packed vectors.
    est = 2 * 1024 * 1024 + batch * 6 * 1024
    return int(min(64 * 1024 * 1024, max(8 * 1024 * 1024, est)))


def mlp_forward(x, prepared):
    B = x.shape[0]
    assert B > 1, "training-mode BatchNorm needs batch size > 1"
    if x.shape[1] != N_RAW:
        # forward() only reads columns 0..11; narrow before the kernel.
        x = x[:, :N_RAW]
    x = x.astype(jnp.float32)

    vmem_spec = pl.BlockSpec(memory_space=pltpu.MemorySpace.VMEM)

    return pl.pallas_call(
        mlp_kernel,
        out_shape=jax.ShapeDtypeStruct((B, 3), jnp.float32),
        in_specs=[vmem_spec] * 6,
        out_specs=vmem_spec,
        compiler_params=pltpu.CompilerParams(
            vmem_limit_bytes=_vmem_limit_bytes(B)),
    )(x, prepared["vecs"], prepared["w1"], prepared["w2"],
      prepared["w3"], prepared["w4"])


def mlp_reference(x, params):
    """Pure-JAX reference with PyTorch semantics (including the b1..b3 adds)."""

    def bn_ref(h, gamma, beta):
        mu = jnp.mean(h, axis=0, keepdims=True)
        var = jnp.mean((h - mu) ** 2, axis=0, keepdims=True)
        return (h - mu) * jax.lax.rsqrt(var + EPS) * gamma + beta

    x0 = jnp.concatenate([x[:, :6], x[:, 7:8], x[:, 9:12]], axis=1)
    h = bn_ref(x0, params["g0"], params["be0"])
    h = jnp.maximum(bn_ref(h @ params["w1"] + params["b1"],
                           params["g1"], params["be1"]), 0.0)
    h = jnp.maximum(bn_ref(h @ params["w2"] + params["b2"],
                           params["g2"], params["be2"]), 0.0)
    h = jnp.maximum(bn_ref(h @ params["w3"] + params["b3"],
                           params["g3"], params["be3"]), 0.0)
    return h @ params["w4"] + params["b4"]


if __name__ == "__main__":
    key = jax.random.PRNGKey(0)
    kx, kp = jax.random.split(key)

    B, F_IN = 8, 12  # forward indexes up to column 11, so >= 12 input features
    x = jax.random.normal(kx, (B, F_IN), jnp.float32)
    params = init_params(kp)

    prepared = prepare_params(params)   # one-time packing, reused across calls
    out = jax.jit(mlp_forward)(x, prepared)
    out = jax.block_until_ready(out)

    ref = mlp_reference(x, params)
    assert out.shape == (B, 3)
    assert jnp.allclose(out, ref, atol=1e-4, rtol=1e-4), "mismatch vs reference"

    print("KERNEL_OK")
</pallas_src>

<mosaic_0001>
module attributes {stable_mosaic.version = 11 : i64} {
  func.func @mlp_kernel(%arg0: memref<8x12xf32, #tpu.memory_space<vmem>>, %arg1: memref<16x256xf32, #tpu.memory_space<vmem>>, %arg2: memref<12x256xf32, #tpu.memory_space<vmem>>, %arg3: memref<256x64xf32, #tpu.memory_space<vmem>>, %arg4: memref<64x32xf32, #tpu.memory_space<vmem>>, %arg5: memref<32x3xf32, #tpu.memory_space<vmem>>, %arg6: memref<8x3xf32, #tpu.memory_space<vmem>>) attributes {dimension_semantics = [], scalar_prefetch = 0 : i64, scratch_operands = 0 : i64, tpu.core_type = #tpu.core_type<tc>} {
    %cst = arith.constant 1.000000e+00 : f32
    %0 = vector.broadcast %cst : f32 to vector<1x8xf32>
    %c0 = arith.constant 0 : index
    %c0_0 = arith.constant 0 : index
    %1 = vector.load %arg0[%c0, %c0_0] : memref<8x12xf32, #tpu.memory_space<vmem>>, vector<8x12xf32>
    %c0_1 = arith.constant 0 : index
    %c0_2 = arith.constant 0 : index
    %2 = vector.load %arg1[%c0_1, %c0_2] : memref<16x256xf32, #tpu.memory_space<vmem>>, vector<1x12xf32>
    %c1 = arith.constant 1 : index
    %c0_3 = arith.constant 0 : index
    %3 = vector.load %arg1[%c1, %c0_3] : memref<16x256xf32, #tpu.memory_space<vmem>>, vector<1x12xf32>
    %cst_4 = arith.constant dense<0.000000e+00> : vector<1x12xf32>
    %4 = tpu.matmul %0, %1, %cst_4 {dimension_numbers = #tpu.dot_dimension_numbers<[1], [0], [0], [1], [0, 0, 1, 1], [], []>} : vector<1x8xf32>, vector<8x12xf32>, vector<1x12xf32> -> vector<1x12xf32>
    %cst_5 = arith.constant 1.250000e-01 : f32
    %5 = vector.broadcast %cst_5 : f32 to vector<1x12xf32>
    %6 = arith.mulf %4, %5 : vector<1x12xf32>
    %7 = vector.broadcast %6 : vector<1x12xf32> to vector<8x12xf32>
    %8 = arith.subf %1, %7 : vector<8x12xf32>
    %9 = arith.mulf %8, %8 : vector<8x12xf32>
    %cst_6 = arith.constant dense<0.000000e+00> : vector<1x12xf32>
    %10 = tpu.matmul %0, %9, %cst_6 {dimension_numbers = #tpu.dot_dimension_numbers<[1], [0], [0], [1], [0, 0, 1, 1], [], []>} : vector<1x8xf32>, vector<8x12xf32>, vector<1x12xf32> -> vector<1x12xf32>
    %cst_7 = arith.constant 1.250000e-01 : f32
    %11 = vector.broadcast %cst_7 : f32 to vector<1x12xf32>
    %12 = arith.mulf %10, %11 : vector<1x12xf32>
    %cst_8 = arith.constant 9.99999974E-6 : f32
    %13 = vector.broadcast %cst_8 : f32 to vector<1x12xf32>
    %14 = arith.addf %12, %13 : vector<1x12xf32>
    %15 = math.rsqrt %14 : vector<1x12xf32>
    %16 = arith.mulf %2, %15 : vector<1x12xf32>
    %17 = vector.broadcast %16 : vector<1x12xf32> to vector<8x12xf32>
    %18 = arith.mulf %8, %17 : vector<8x12xf32>
    %c0_9 = arith.constant 0 : index
    %c0_10 = arith.constant 0 : index
    %19 = vector.load %arg2[%c0_9, %c0_10] : memref<12x256xf32, #tpu.memory_space<vmem>>, vector<12x256xf32>
    %cst_11 = arith.constant dense<0.000000e+00> : vector<1x256xf32>
    %20 = tpu.matmul %3, %19, %cst_11 {dimension_numbers = #tpu.dot_dimension_numbers<[1], [0], [0], [1], [0, 0, 1, 1], [], []>} : vector<1x12xf32>, vector<12x256xf32>, vector<1x256xf32> -> vector<1x256xf32>
    %c0_12 = arith.constant 0 : index
    %c0_13 = arith.constant 0 : index
    %21 = vector.load %arg2[%c0_12, %c0_13] : memref<12x256xf32, #tpu.memory_space<vmem>>, vector<12x256xf32>
    %cst_14 = arith.constant dense<0.000000e+00> : vector<8x256xf32>
    %22 = tpu.matmul %18, %21, %cst_14 {dimension_numbers = #tpu.dot_dimension_numbers<[1], [0], [0], [1], [0, 0, 1, 1], [], []>} : vector<8x12xf32>, vector<12x256xf32>, vector<8x256xf32> -> vector<8x256xf32>
    %23 = vector.broadcast %20 : vector<1x256xf32> to vector<8x256xf32>
    %24 = arith.addf %22, %23 : vector<8x256xf32>
    %c2 = arith.constant 2 : index
    %c0_15 = arith.constant 0 : index
    %25 = vector.load %arg1[%c2, %c0_15] : memref<16x256xf32, #tpu.memory_space<vmem>>, vector<1x256xf32>
    %c3 = arith.constant 3 : index
    %c0_16 = arith.constant 0 : index
    %26 = vector.load %arg1[%c3, %c0_16] : memref<16x256xf32, #tpu.memory_space<vmem>>, vector<1x256xf32>
    %cst_17 = arith.constant dense<0.000000e+00> : vector<1x256xf32>
    %27 = tpu.matmul %0, %24, %cst_17 {dimension_numbers = #tpu.dot_dimension_numbers<[1], [0], [0], [1], [0, 0, 1, 1], [], []>} : vector<1x8xf32>, vector<8x256xf32>, vector<1x256xf32> -> vector<1x256xf32>
    %cst_18 = arith.constant 1.250000e-01 : f32
    %28 = vector.broadcast %cst_18 : f32 to vector<1x256xf32>
    %29 = arith.mulf %27, %28 : vector<1x256xf32>
    %30 = arith.mulf %24, %24 : vector<8x256xf32>
    %cst_19 = arith.constant dense<0.000000e+00> : vector<1x256xf32>
    %31 = tpu.matmul %0, %30, %cst_19 {dimension_numbers = #tpu.dot_dimension_numbers<[1], [0], [0], [1], [0, 0, 1, 1], [], []>} : vector<1x8xf32>, vector<8x256xf32>, vector<1x256xf32> -> vector<1x256xf32>
    %cst_20 = arith.constant 1.250000e-01 : f32
    %32 = vector.broadcast %cst_20 : f32 to vector<1x256xf32>
    %33 = arith.mulf %31, %32 : vector<1x256xf32>
    %34 = arith.mulf %29, %29 : vector<1x256xf32>
    %35 = arith.subf %33, %34 : vector<1x256xf32>
    %cst_21 = arith.constant 0.000000e+00 : f32
    %36 = vector.broadcast %cst_21 : f32 to vector<1x256xf32>
    %37 = arith.maximumf %35, %36 : vector<1x256xf32>
    %cst_22 = arith.constant 9.99999974E-6 : f32
    %38 = vector.broadcast %cst_22 : f32 to vector<1x256xf32>
    %39 = arith.addf %37, %38 : vector<1x256xf32>
    %40 = math.rsqrt %39 : vector<1x256xf32>
    %41 = arith.mulf %25, %40 : vector<1x256xf32>
    %42 = arith.mulf %29, %41 : vector<1x256xf32>
    %43 = arith.subf %26, %42 : vector<1x256xf32>
    %44 = vector.broadcast %41 : vector<1x256xf32> to vector<8x256xf32>
    %45 = arith.mulf %24, %44 : vector<8x256xf32>
    %46 = vector.broadcast %43 : vector<1x256xf32> to vector<8x256xf32>
    %47 = arith.addf %45, %46 : vector<8x256xf32>
    %cst_23 = arith.constant 0.000000e+00 : f32
    %48 = vector.broadcast %cst_23 : f32 to vector<8x256xf32>
    %49 = arith.maximumf %47, %48 : vector<8x256xf32>
    %c0_24 = arith.constant 0 : index
    %c0_25 = arith.constant 0 : index
    %50 = vector.load %arg3[%c0_24, %c0_25] : memref<256x64xf32, #tpu.memory_space<vmem>>, vector<256x64xf32>
    %cst_26 = arith.constant dense<0.000000e+00> : vector<8x64xf32>
    %51 = tpu.matmul %49, %50, %cst_26 {dimension_numbers = #tpu.dot_dimension_numbers<[1], [0], [0], [1], [0, 0, 1, 1], [], []>} : vector<8x256xf32>, vector<256x64xf32>, vector<8x64xf32> -> vector<8x64xf32>
    %c4 = arith.constant 4 : index
    %c0_27 = arith.constant 0 : index
    %52 = vector.load %arg1[%c4, %c0_27] : memref<16x256xf32, #tpu.memory_space<vmem>>, vector<1x64xf32>
    %c5 = arith.constant 5 : index
    %c0_28 = arith.constant 0 : index
    %53 = vector.load %arg1[%c5, %c0_28] : memref<16x256xf32, #tpu.memory_space<vmem>>, vector<1x64xf32>
    %cst_29 = arith.constant dense<0.000000e+00> : vector<1x64xf32>
    %54 = tpu.matmul %0, %51, %cst_29 {dimension_numbers = #tpu.dot_dimension_numbers<[1], [0], [0], [1], [0, 0, 1, 1], [], []>} : vector<1x8xf32>, vector<8x64xf32>, vector<1x64xf32> -> vector<1x64xf32>
    %cst_30 = arith.constant 1.250000e-01 : f32
    %55 = vector.broadcast %cst_30 : f32 to vector<1x64xf32>
    %56 = arith.mulf %54, %55 : vector<1x64xf32>
    %57 = arith.mulf %51, %51 : vector<8x64xf32>
    %cst_31 = arith.constant dense<0.000000e+00> : vector<1x64xf32>
    %58 = tpu.matmul %0, %57, %cst_31 {dimension_numbers = #tpu.dot_dimension_numbers<[1], [0], [0], [1], [0, 0, 1, 1], [], []>} : vector<1x8xf32>, vector<8x64xf32>, vector<1x64xf32> -> vector<1x64xf32>
    %cst_32 = arith.constant 1.250000e-01 : f32
    %59 = vector.broadcast %cst_32 : f32 to vector<1x64xf32>
    %60 = arith.mulf %58, %59 : vector<1x64xf32>
    %61 = arith.mulf %56, %56 : vector<1x64xf32>
    %62 = arith.subf %60, %61 : vector<1x64xf32>
    %cst_33 = arith.constant 0.000000e+00 : f32
    %63 = vector.broadcast %cst_33 : f32 to vector<1x64xf32>
    %64 = arith.maximumf %62, %63 : vector<1x64xf32>
    %cst_34 = arith.constant 9.99999974E-6 : f32
    %65 = vector.broadcast %cst_34 : f32 to vector<1x64xf32>
    %66 = arith.addf %64, %65 : vector<1x64xf32>
    %67 = math.rsqrt %66 : vector<1x64xf32>
    %68 = arith.mulf %52, %67 : vector<1x64xf32>
    %69 = arith.mulf %56, %68 : vector<1x64xf32>
    %70 = arith.subf %53, %69 : vector<1x64xf32>
    %71 = vector.broadcast %68 : vector<1x64xf32> to vector<8x64xf32>
    %72 = arith.mulf %51, %71 : vector<8x64xf32>
    %73 = vector.broadcast %70 : vector<1x64xf32> to vector<8x64xf32>
    %74 = arith.addf %72, %73 : vector<8x64xf32>
    %cst_35 = arith.constant 0.000000e+00 : f32
    %75 = vector.broadcast %cst_35 : f32 to vector<8x64xf32>
    %76 = arith.maximumf %74, %75 : vector<8x64xf32>
    %c0_36 = arith.constant 0 : index
    %c0_37 = arith.constant 0 : index
    %77 = vector.load %arg4[%c0_36, %c0_37] : memref<64x32xf32, #tpu.memory_space<vmem>>, vector<64x32xf32>
    %cst_38 = arith.constant dense<0.000000e+00> : vector<8x32xf32>
    %78 = tpu.matmul %76, %77, %cst_38 {dimension_numbers = #tpu.dot_dimension_numbers<[1], [0], [0], [1], [0, 0, 1, 1], [], []>} : vector<8x64xf32>, vector<64x32xf32>, vector<8x32xf32> -> vector<8x32xf32>
    %c6 = arith.constant 6 : index
    %c0_39 = arith.constant 0 : index
    %79 = vector.load %arg1[%c6, %c0_39] : memref<16x256xf32, #tpu.memory_space<vmem>>, vector<1x32xf32>
    %c7 = arith.constant 7 : index
    %c0_40 = arith.constant 0 : index
    %80 = vector.load %arg1[%c7, %c0_40] : memref<16x256xf32, #tpu.memory_space<vmem>>, vector<1x32xf32>
    %cst_41 = arith.constant dense<0.000000e+00> : vector<1x32xf32>
    %81 = tpu.matmul %0, %78, %cst_41 {dimension_numbers = #tpu.dot_dimension_numbers<[1], [0], [0], [1], [0, 0, 1, 1], [], []>} : vector<1x8xf32>, vector<8x32xf32>, vector<1x32xf32> -> vector<1x32xf32>
    %cst_42 = arith.constant 1.250000e-01 : f32
    %82 = vector.broadcast %cst_42 : f32 to vector<1x32xf32>
    %83 = arith.mulf %81, %82 : vector<1x32xf32>
    %84 = arith.mulf %78, %78 : vector<8x32xf32>
    %cst_43 = arith.constant dense<0.000000e+00> : vector<1x32xf32>
    %85 = tpu.matmul %0, %84, %cst_43 {dimension_numbers = #tpu.dot_dimension_numbers<[1], [0], [0], [1], [0, 0, 1, 1], [], []>} : vector<1x8xf32>, vector<8x32xf32>, vector<1x32xf32> -> vector<1x32xf32>
    %cst_44 = arith.constant 1.250000e-01 : f32
    %86 = vector.broadcast %cst_44 : f32 to vector<1x32xf32>
    %87 = arith.mulf %85, %86 : vector<1x32xf32>
    %88 = arith.mulf %83, %83 : vector<1x32xf32>
    %89 = arith.subf %87, %88 : vector<1x32xf32>
    %cst_45 = arith.constant 0.000000e+00 : f32
    %90 = vector.broadcast %cst_45 : f32 to vector<1x32xf32>
    %91 = arith.maximumf %89, %90 : vector<1x32xf32>
    %cst_46 = arith.constant 9.99999974E-6 : f32
    %92 = vector.broadcast %cst_46 : f32 to vector<1x32xf32>
    %93 = arith.addf %91, %92 : vector<1x32xf32>
    %94 = math.rsqrt %93 : vector<1x32xf32>
    %95 = arith.mulf %79, %94 : vector<1x32xf32>
    %96 = arith.mulf %83, %95 : vector<1x32xf32>
    %97 = arith.subf %80, %96 : vector<1x32xf32>
    %98 = vector.broadcast %95 : vector<1x32xf32> to vector<8x32xf32>
    %99 = arith.mulf %78, %98 : vector<8x32xf32>
    %100 = vector.broadcast %97 : vector<1x32xf32> to vector<8x32xf32>
    %101 = arith.addf %99, %100 : vector<8x32xf32>
    %cst_47 = arith.constant 0.000000e+00 : f32
    %102 = vector.broadcast %cst_47 : f32 to vector<8x32xf32>
    %103 = arith.maximumf %101, %102 : vector<8x32xf32>
    %c8 = arith.constant 8 : index
    %c0_48 = arith.constant 0 : index
    %104 = vector.load %arg1[%c8, %c0_48] : memref<16x256xf32, #tpu.memory_space<vmem>>, vector<1x3xf32>
    %c0_49 = arith.constant 0 : index
    %c0_50 = arith.constant 0 : index
    %105 = vector.load %arg5[%c0_49, %c0_50] : memref<32x3xf32, #tpu.memory_space<vmem>>, vector<32x3xf32>
    %cst_51 = arith.constant dense<0.000000e+00> : vector<8x3xf32>
    %106 = tpu.matmul %103, %105, %cst_51 {dimension_numbers = #tpu.dot_dimension_numbers<[1], [0], [0], [1], [0, 0, 1, 1], [], []>} : vector<8x32xf32>, vector<32x3xf32>, vector<8x3xf32> -> vector<8x3xf32>
    %107 = vector.broadcast %104 : vector<1x3xf32> to vector<8x3xf32>
    %108 = arith.addf %106, %107 : vector<8x3xf32>
    %c0_52 = arith.constant 0 : index
    %c0_53 = arith.constant 0 : index
    %109 = vector.load %arg6[%c0_52, %c0_53] : memref<8x3xf32, #tpu.memory_space<vmem>>, vector<8x3xf32>
    tpu.vector_store %arg6[%c0_52, %c0_53], %108 {strides = array<i32>} : memref<8x3xf32, #tpu.memory_space<vmem>>, vector<8x3xf32>,
    return
  }
}

</mosaic_0001>

<bundles_post_ra>
// kernel: mlp_forward.1
= control target key start
LH: loop header
LB: loop body
LE: loop exit
PB: predicated region body
PF: predicated region fallthrough
CT: control target
= control target key end

     0   :  { %vm26_vm0 = vcmask 64512   ;;  %v1334_v0 = vmov 0.0   ;;  %vm1335_vm1 = vmmov 0   ;;  %v1336_v2 = vmov 1.0   ;;  %s1635_s0 = inlined_call_operand.vmem [shape: f32[8,12], index: 0, kind: input, shape index: {}]   ;;  %s1636_s2 = inlined_call_operand.vmem [shape: f32[12,256], index: 2, kind: input, shape index: {}]   ;;  %s1637_s1 = inlined_call_operand.vmem [shape: f32[16,256], index: 1, kind: input, shape index: {}]   ;;  %s1638_s3 = inlined_call_operand.vmem [shape: f32[256,64], index: 3, kind: input, shape index: {}]   ;;  %s1639_s4 = inlined_call_operand.vmem [shape: f32[64,32], index: 4, kind: input, shape index: {}]   ;;  %s1640_s5 = inlined_call_operand.vmem [shape: f32[32,3], index: 5, kind: input, shape index: {}]   ;;  %s1641_s6 = inlined_call_operand.vmem [shape: f32[8,3], index: 6, kind: output, shape index: {}]  }
   0x1   :  { %1260 = vmatprep.subr.mxu0 %v1334_v0  ;;  %v23_v1 = vld [vmem:[%s1635_s0] sm:$0xff]  ;;  %1262 = vmatprep.mubr.msk.f32.mxu0 %vm1335_vm1, %v1334_v0  ;;  %v101_v3 = vlaneseq  ;;  %v189_v12 = vld [vmem:[%s1636_s2 + $0x18] sm:$0xf]  ;;  %vm194_vm2 = vcmask 1043456   ;;  %v188_v13 = vld [vmem:[%s1636_s2 + $0x10] sm:$0xf] }
   0x2   :  { %1261 = vmatpush3.msra.mxu0 %v23_v1  ;;  %1265 = vmatprep.subr.mxu1 %v1334_v0  ;;  %v187_v14 = vld [vmem:[%s1636_s2 + $0x8] sm:$0xff]  ;;  %v186_v15 = vld [vmem:[%s1636_s2] sm:$0xff]  ;;  %vm190_vm3 = vcmask 97280   ;;  %v615_v36 = vld [vmem:[%s1638_s3 + $0xf8] sm:$0xff]  ;;  %vm858_vm4 = vcmask 523264   ;;  %vm1101_vm5 = vcmask 261120  }
   0x3   :  { %1263 = vmatmul.mubr.msk.f32.vlgmr.msra.gmra.mxu0 %vm26_vm0, %v1336_v2  ;;  %1267 = vmatprep.mubr.msk.f32.mxu1 %vm1335_vm1, %v1334_v0  ;;  %v1385_v4 = vshrl.u32 %v101_v3, 7  ;;  %v25_v16 = vld [vmem:[%s1637_s1 + $0x1] ss:$0 sm:$0xff]  ;;  %v24_v21 = vld [vmem:[%s1637_s1] ss:$0 sm:$0xff]  ;;  %v599_v37 = vld [vmem:[%s1638_s3 + $0x78] sm:$0xff] }
   0x4   :  { %422 = vmatprep.mubr.f32.mxu0 %v1334_v0  ;;  %v614_v38 = vld [vmem:[%s1638_s3 + $0xf0] sm:$0xff]  ;;  %v613_v40 = vld [vmem:[%s1638_s3 + $0xe8] sm:$0xff]  ;;  %v612_v42 = vld [vmem:[%s1638_s3 + $0xe0] sm:$0xff]  ;;  %vm1175_vm6 = vcmask 23552  }
   0x5   :  { %v1388_v5 = vsub.s32 0, %v1385_v4  ;;  %v598_v39 = vld [vmem:[%s1638_s3 + $0x70] sm:$0xff]  ;;  %v597_v41 = vld [vmem:[%s1638_s3 + $0x68] sm:$0xff]  ;;  %v596_v43 = vld [vmem:[%s1638_s3 + $0x60] sm:$0xff] }
   0x6   :  { %v611_v44 = vld [vmem:[%s1638_s3 + $0xd8] sm:$0xff]  ;;  %v610_v46 = vld [vmem:[%s1638_s3 + $0xd0] sm:$0xff]  ;;  %v609_v48 = vld [vmem:[%s1638_s3 + $0xc8] sm:$0xff] }
   0x7   :  { %v595_v45 = vld [vmem:[%s1638_s3 + $0x58] sm:$0xff]  ;;  %v594_v47 = vld [vmem:[%s1638_s3 + $0x50] sm:$0xff]  ;;  %v593_v49 = vld [vmem:[%s1638_s3 + $0x48] sm:$0xff] }
   0x8   :  { %v608_v50 = vld [vmem:[%s1638_s3 + $0xc0] sm:$0xff]  ;;  %v607_v52 = vld [vmem:[%s1638_s3 + $0xb8] sm:$0xff]  ;;  %v606_v54 = vld [vmem:[%s1638_s3 + $0xb0] sm:$0xff] }
   0x9   :  { %v592_v51 = vld [vmem:[%s1638_s3 + $0x40] sm:$0xff]  ;;  %v591_v53 = vld [vmem:[%s1638_s3 + $0x38] sm:$0xff]  ;;  %v590_v55 = vld [vmem:[%s1638_s3 + $0x30] sm:$0xff] }
   0xa   :  { %v605_v56 = vld [vmem:[%s1638_s3 + $0xa8] sm:$0xff]  ;;  %v604_v58 = vld [vmem:[%s1638_s3 + $0xa0] sm:$0xff]  ;;  %v603_v60 = vld [vmem:[%s1638_s3 + $0x98] sm:$0xff] }
   0xb   :  { %v589_v57 = vld [vmem:[%s1638_s3 + $0x28] sm:$0xff]  ;;  %v588_v59 = vld [vmem:[%s1638_s3 + $0x20] sm:$0xff]  ;;  %v587_v61 = vld [vmem:[%s1638_s3 + $0x18] sm:$0xff] }
   0xc   :  { %v602_v62 = vld [vmem:[%s1638_s3 + $0x90] sm:$0xff]  ;;  %v585_v3 = vld [vmem:[%s1638_s3 + $0x8] sm:$0xff] }
   0xd   :  { %v586_v63 = vld [vmem:[%s1638_s3 + $0x10] sm:$0xff] }
  0xc3   :  { %v96_v6 = vpop.f32.mrf.mxu0 }
  0xc4   :  { %v100_v7 = vmul.f32 0.125, %v96_v6  ;;  %v600_v6 = vld [vmem:[%s1638_s3 + $0x80] sm:$0xff] }
  0xc5   :  { %v1264_v8 = vpop.f32.mrf.mxu0 }
  0xc6   :  { %v104_v9 = vrot.slane %v100_v7, %v1388_v5  ;;  %v584_v7 = vld [vmem:[%s1638_s3] sm:$0xff] }
  0xc8   :  { %v105_v10 = vsub.f32 %v23_v1, %v104_v9  ;;  %v601_v1 = vld [vmem:[%s1638_s3 + $0x88] sm:$0xff] }
  0xca   :  { %v106_v11 = vmul.f32 %v105_v10, %v105_v10 }
  0xcc   :  { %1266 = vmatpush3.msra.mxu1 %v106_v11 }
  0xcd   :  { %1268 = vmatmul.mubr.msk.f32.vlgmr.msra.gmra.mxu1 %vm26_vm0, %v1336_v2  ;;  %1183 = vmatprep.subr.msk.mxu1 %vm194_vm2, %v189_v12 }
  0xce   :  { %265 = vmatprep.mubr.f32.mxu1 %v1334_v0  ;;  %1184 = vmatpush1.msk.msra.mxu1 %vm194_vm2, %v188_v13 }
  0xcf   :  { %231 = vmatprep.subr.mxu1 %v187_v14 }
  0xd0   :  { %232 = vmatpush1.msra.mxu1 %v186_v15 }
  0xd1   :  { %1185 = vmatmul.mubr.msk.f32.vlgmr.msra.gmra.mxu1 %vm190_vm3, %v25_v16  ;;  %1186 = vmatprep.subr.msk.mxu1 %vm194_vm2, %v189_v12 }
  0xd2   :  { %1187 = vmatpush1.msk.msra.mxu1 %vm194_vm2, %v188_v13  ;;  %347 = vmatprep.mubr.f32.mxu1 %v1334_v0 }
  0xd3   :  { %313 = vmatprep.subr.mxu1 %v187_v14 }
  0xd4   :  { %314 = vmatpush1.msra.mxu1 %v186_v15 }
 0x18d   :  { %v173_v17 = vpop.f32.mrf.mxu1 }
 0x18e   :  { %v177_v18 = vmul.f32 0.125, %v173_v17 }
 0x18f   :  { %v1269_v19 = vpop.f32.mrf.mxu1 }
 0x190   :  { %v178_v20 = vadd.f32 1e-05, %v177_v18 }
 0x191   :  { %v267_v26 = vpop.f32.mrf.mxu1 }
 0x192   :  { %1324 = vrsqrt.f32 %v178_v20  ;;  %v275_v28 = vrot.slane %v267_v26, %v1388_v5 }
 0x193   :  { %v269_v27 = vpop.f32.mrf.mxu1 }
 0x194   :  { %v279_v30 = vrot.slane %v269_v27, %v1388_v5 }
 0x19f   :  { %v1325_v22 = vpop.eup %1324 }
 0x1a0   :  { %v180_v23 = vmul.f32 %v1325_v22, %v24_v21 }
 0x1a2   :  { %v184_v24 = vrot.slane %v180_v23, %v1388_v5 }
 0x1a4   :  { %v185_v25 = vmul.f32 %v184_v24, %v105_v10  ;;  %v1337_v24 = vmov 1966171168  }
 0x1a6   :  { %1188 = vmatmul.mubr.msk.f32.vlgmr.msra.gmra.mxu1 %vm190_vm3, %v185_v25  ;;  %v520_v25 = vunpack.c.l.s4 %v1337_v24 }
 0x1a7   :  { %497 = vmatprep.mubr.f32.mxu1 %v1334_v0 }
 0x1a8   :  { %v521_v26 = vunpack.c.0.s8 %v520_v25 }
 0x266   :  { %v349_v29 = vpop.f32.mrf.mxu1 }
 0x267   :  { %v1419_v31 = vadd.f32 %v349_v29, %v275_v28  ;;  %v524_v28 = vsub.s32 %v521_v26, %v1385_v4 }
 0x268   :  { %v351_v32 = vpop.f32.mrf.mxu1 }
 0x269   :  { %v1421_v33 = vadd.f32 %v351_v32, %v279_v30  ;;  %v431_v35 = vmul.f32 %v1419_v31, %v1419_v31 }
 0x26b   :  { %388 = vmatprep.subr.mxu0 %v1421_v33  ;;  %v432_v34 = vmul.f32 %v1421_v33, %v1421_v33 }
 0x26c   :  { %389 = vmatpush1.msra.mxu0 %v1419_v31 }
 0x26d   :  { %1191 = vmatmul.mubr.msk.f32.vlgmr.msra.gmra.mxu0 %vm26_vm0, %v1336_v2  ;;  %463 = vmatprep.subr.mxu1 %v432_v34  ;;  %v1189_v34 = vld [vmem:[%s1637_s1 + $0x2] ss:$8 sm:$0x3] }
 0x26e   :  { %464 = vmatpush1.msra.mxu1 %v431_v35  ;;  %1203 = vmatprep.subr.mxu0 %v615_v36  ;;  %v542_v36 = vsub.s32 1, %v1385_v4 }
 0x26f   :  { %1192 = vmatmul.mubr.msk.f32.vlgmr.msra.gmra.mxu1 %vm26_vm0, %v1336_v2  ;;  %1270 = vmatprep.subr.mxu1 %v1334_v0 }
 0x270   :  { %1272 = vmatprep.mubr.msk.f32.mxu1 %vm1335_vm1, %v1334_v0  ;;  %1204 = vmatpush3.msra.mxu0 %v599_v37 }
 0x271   :  { %1205 = vmatprep.subr.mxu0 %v614_v38 }
 0x272   :  { %1206 = vmatpush3.msra.mxu0 %v598_v39 }
 0x273   :  { %1207 = vmatprep.subr.mxu0 %v613_v40 }
 0x274   :  { %1208 = vmatpush3.msra.mxu0 %v597_v41 }
 0x275   :  { %1209 = vmatprep.subr.mxu0 %v612_v42 }
 0x276   :  { %1210 = vmatpush3.msra.mxu0 %v596_v43 }
 0x277   :  { %1211 = vmatprep.subr.mxu0 %v611_v44  ;;  %v1190_v44 = vld [vmem:[%s1637_s1 + $0x3] ss:$8 sm:$0x3] }
 0x278   :  { %1212 = vmatpush3.msra.mxu0 %v595_v45 }
 0x279   :  { %1213 = vmatprep.subr.mxu0 %v610_v46 }
 0x27a   :  { %1214 = vmatpush3.msra.mxu0 %v594_v47 }
 0x27b   :  { %1215 = vmatprep.subr.mxu0 %v609_v48 }
 0x27c   :  { %1216 = vmatpush3.msra.mxu0 %v593_v49 }
 0x27d   :  { %1217 = vmatprep.subr.mxu0 %v608_v50 }
 0x27e   :  { %1218 = vmatpush3.msra.mxu0 %v592_v51 }
 0x27f   :  { %1219 = vmatprep.subr.mxu0 %v607_v52 }
 0x280   :  { %1220 = vmatpush3.msra.mxu0 %v591_v53 }
 0x281   :  { %1221 = vmatprep.subr.mxu0 %v606_v54 }
 0x282   :  { %1222 = vmatpush3.msra.mxu0 %v590_v55 }
 0x283   :  { %1223 = vmatprep.subr.mxu0 %v605_v56 }
 0x284   :  { %1224 = vmatpush3.msra.mxu0 %v589_v57 }
 0x285   :  { %1225 = vmatprep.subr.mxu0 %v604_v58  ;;  %v855_v58 = vld [vmem:[%s1639_s4 + $0x28] sm:$0xff] }
 0x286   :  { %1226 = vmatpush3.msra.mxu0 %v588_v59  ;;  %v854_v59 = vld [vmem:[%s1639_s4 + $0x20] sm:$0xff] }
 0x287   :  { %1227 = vmatprep.subr.mxu0 %v603_v60  ;;  %v853_v60 = vld [vmem:[%s1639_s4 + $0x18] sm:$0xff] }
 0x288   :  { %1228 = vmatpush3.msra.mxu0 %v587_v61  ;;  %v852_v61 = vld [vmem:[%s1639_s4 + $0x10] sm:$0xff] }
 0x289   :  { %1229 = vmatprep.subr.mxu0 %v602_v62  ;;  %v851_v62 = vld [vmem:[%s1639_s4 + $0x8] sm:$0xff] }
 0x28a   :  { %1230 = vmatpush3.msra.mxu0 %v586_v63  ;;  %v850_v63 = vld [vmem:[%s1639_s4] sm:$0xff] }
 0x28b   :  { %1231 = vmatprep.subr.mxu0 %v601_v1 }
 0x28c   :  { %1232 = vmatpush3.msra.mxu0 %v585_v3 }
 0x28d   :  { %1233 = vmatprep.subr.mxu0 %v600_v6 }
 0x28e   :  { %1234 = vmatpush3.msra.mxu0 %v584_v7 }
 0x28f   :  { %1309 = vmatprep.subr.mxu0 %v1334_v0 }
 0x32d   :  { %v424_v8 = vpop.f32.mrf.mxu0 }
 0x32e   :  { %v429_v9 = vmul.f32 0.125, %v424_v8 }
 0x32f   :  { %v426_v10 = vpop.f32.mrf.mxu0  ;;  %v499_v11 = vpop.f32.mrf.mxu1 }
 0x330   :  { %v506_v12 = vmul.f32 %v429_v9, %v429_v9  ;;  %v430_v13 = vmul.f32 0.125, %v426_v10  ;;  %v504_v14 = vmul.f32 0.125, %v499_v11 }
 0x331   :  { %v501_v15 = vpop.f32.mrf.mxu1 }
 0x332   :  { %v507_v16 = vmul.f32 %v430_v13, %v430_v13  ;;  %v508_v17 = vsub.f32 %v504_v14, %v506_v12  ;;  %v505_v18 = vmul.f32 0.125, %v501_v15  ;;  %v686_v14 = vld [vmem:[%s1637_s1 + $0x4] ss:$0 sm:$0xff] }
 0x334   :  { %v510_v19 = vmax.f32 %v508_v17, 0.0  ;;  %v509_v20 = vsub.f32 %v505_v18, %v507_v16  ;;  %v687_v17 = vld [vmem:[%s1637_s1 + $0x5] ss:$0 sm:$0xff] }
 0x336   :  { %v512_v21 = vadd.f32 1e-05, %v510_v19  ;;  %v511_v22 = vmax.f32 %v509_v20, 0.0 }
 0x338   :  { %v513_v23 = vadd.f32 1e-05, %v511_v22  ;;  %1326 = vrsqrt.f32 %v512_v21 }
 0x33a   :  { %1328 = vrsqrt.f32 %v513_v23 }
 0x345   :  { %v1327_v27 = vpop.eup %1326 }
 0x347   :  { %v1329_v29 = vpop.eup %1328 }
 0x348   :  { %v518_v30 = vcombine.low %v1327_v27, %v1329_v29  ;;  %v1099_v29 = vld [vmem:[%s1640_s5 + $0x10] sm:$0xff] }
 0x34a   :  { %v525_v32 = vrot.slane %v518_v30, %v524_v28  ;;  %v1098_v30 = vld [vmem:[%s1640_s5 + $0x8] sm:$0xff] }
 0x34c   :  { %v532_v35 = vrot.slane %v525_v32, %v524_v28 }
 0x34e   :  { %v534_v37 = vmul.f32 %v1189_v34, %v532_v35 }
 0x350   :  { %v539_v38 = vrot.slane %v534_v37, %v1388_v5  ;;  %v543_v39 = vrot.slane %v534_v37, %v542_v36 }
 0x352   :  { %v546_v40 = vmul.f32 %v539_v38, %v429_v9  ;;  %v547_v41 = vmul.f32 %v543_v39, %v430_v13  ;;  %v568_v47 = vmul.f32 %v543_v39, %v1421_v33  ;;  %v567_v49 = vmul.f32 %v539_v38, %v1419_v31  ;;  %v857_v31 = vld [vmem:[%s1639_s4 + $0x38] sm:$0xff]  ;;  %v856_v33 = vld [vmem:[%s1639_s4 + $0x30] sm:$0xff] }
 0x354   :  { %v550_v42 = vcombine.low %v546_v40, %v547_v41 }
 0x356   :  { %v557_v43 = vrot.slane %v550_v42, %v524_v28 }
 0x358   :  { %v564_v45 = vrot.slane %v557_v43, %v524_v28  ;;  %v1100_v28 = vld [vmem:[%s1640_s5 + $0x18] sm:$0xff]  ;;  %v932_v43 = vld [vmem:[%s1637_s1 + $0x6] ss:$0 sm:$0xff] }
 0x35a   :  { %v566_v46 = vsub.f32 %v1190_v44, %v564_v45 }
 0x35c   :  { %v577_v48 = vrot.slane %v566_v46, %v542_v36  ;;  %v573_v4 = vrot.slane %v566_v46, %v1388_v5 }
 0x35e   :  { %v581_v50 = vadd.f32 %v577_v48, %v568_v47  ;;  %v580_v51 = vadd.f32 %v573_v4, %v567_v49 }
 0x360   :  { %v583_v52 = vmax.f32 %v581_v50, 0.0  ;;  %v582_v53 = vmax.f32 %v580_v51, 0.0 }
 0x362   :  { %680 = vmatprep.mubr.f32.mxu0 %v583_v52  ;;  %v1096_v52 = vld [vmem:[%s1637_s1 + $0x10] ss:$0 sm:$0xff] }
 0x363   :  { %681 = vmatmul.mubr.f32.vlgmr.msra.gmra.mxu0 %v582_v53 }
 0x364   :  { %1317 = vmatprep.mubr.msk.f32.mxu0 %vm1335_vm1, %v1334_v0  ;;  %1310 = vmatpush3.msra.mxu0 %v1100_v28 }
 0x365   :  { %1311 = vmatprep.subr.mxu0 %v1334_v0 }
 0x366   :  { %1312 = vmatpush3.msra.mxu0 %v1099_v29 }
 0x367   :  { %1313 = vmatprep.subr.mxu0 %v1334_v0 }
 0x368   :  { %1314 = vmatpush3.msra.mxu0 %v1098_v30 }
 0x369   :  { %1315 = vmatprep.subr.mxu0 %v1334_v0 }
 0x423   :  { %v1235_v54 = vpop.f32.mrf.mxu0 }
 0x425   :  { %v1236_v55 = vpop.f32.mrf.mxu0 }
 0x426   :  { %v1237_v56 = vadd.f32 %v1236_v55, %v1235_v54 }
 0x428   :  { %v759_v57 = vmul.f32 %v1237_v56, %v1237_v56  ;;  %1271 = vmatpush3.msra.mxu1 %v1237_v56 }
 0x429   :  { %1273 = vmatmul.mubr.msk.f32.vlgmr.msra.gmra.mxu1 %vm26_vm0, %v1336_v2  ;;  %1275 = vmatprep.subr.mxu1 %v1334_v0 }
 0x42a   :  { %1276 = vmatpush3.msra.mxu1 %v759_v57  ;;  %1277 = vmatprep.mubr.msk.f32.mxu1 %vm1335_vm1, %v1334_v0 }
 0x42b   :  { %1280 = vmatprep.subr.mxu1 %v1334_v0 }
 0x42d   :  { %1278 = vmatmul.mubr.msk.f32.vlgmr.msra.gmra.mxu1 %vm26_vm0, %v1336_v2 }
 0x42e   :  { %1296 = vmatprep.mubr.msk.f32.mxu1 %vm1335_vm1, %v1334_v0  ;;  %1281 = vmatpush3.msra.mxu1 %v857_v31 }
 0x42f   :  { %1282 = vmatprep.subr.mxu1 %v1334_v0 }
 0x430   :  { %1283 = vmatpush3.msra.mxu1 %v856_v33 }
 0x431   :  { %1284 = vmatprep.subr.mxu1 %v1334_v0 }
 0x432   :  { %1285 = vmatpush3.msra.mxu1 %v855_v58 }
 0x433   :  { %1286 = vmatprep.subr.mxu1 %v1334_v0 }
 0x434   :  { %1287 = vmatpush3.msra.mxu1 %v854_v59 }
 0x435   :  { %1288 = vmatprep.subr.mxu1 %v1334_v0 }
 0x436   :  { %1289 = vmatpush3.msra.mxu1 %v853_v60 }
 0x437   :  { %1290 = vmatprep.subr.mxu1 %v1334_v0 }
 0x438   :  { %1291 = vmatpush3.msra.mxu1 %v852_v61 }
 0x439   :  { %1292 = vmatprep.subr.mxu1 %v1334_v0 }
 0x43a   :  { %1293 = vmatpush3.msra.mxu1 %v851_v62 }
 0x43b   :  { %1294 = vmatprep.subr.mxu1 %v1334_v0 }
 0x43c   :  { %1295 = vmatpush3.msra.mxu1 %v850_v63 }
 0x43d   :  { %1299 = vmatprep.subr.mxu1 %v1334_v0 }
 0x4e9   :  { %v754_v1 = vpop.f32.mrf.mxu1 }
 0x4ea   :  { %v758_v3 = vmul.f32 0.125, %v754_v1 }
 0x4eb   :  { %v1274_v6 = vpop.f32.mrf.mxu1 }
 0x4ec   :  { %v831_v8 = vmul.f32 %v758_v3, %v758_v3 }
 0x4ed   :  { %v826_v7 = vpop.f32.mrf.mxu1 }
 0x4ee   :  { %v830_v9 = vmul.f32 0.125, %v826_v7 }
 0x4ef   :  { %v1279_v10 = vpop.f32.mrf.mxu1 }
 0x4f0   :  { %v832_v11 = vsub.f32 %v830_v9, %v831_v8 }
 0x4f2   :  { %v833_v12 = vmax.f32 %v832_v11, 0.0 }
 0x4f4   :  { %v834_v13 = vadd.f32 1e-05, %v833_v12 }
 0x4f6   :  { %1330 = vrsqrt.f32 %v834_v13 }
 0x503   :  { %v1331_v15 = vpop.eup %1330 }
 0x504   :  { %v836_v16 = vmul.f32 %v1331_v15, %v686_v14 }
 0x506   :  { %v837_v18 = vmul.f32 %v836_v16, %v758_v3  ;;  %v842_v19 = vrot.slane %v836_v16, %v1388_v5 }
 0x508   :  { %v838_v20 = vsub.f32 %v687_v17, %v837_v18  ;;  %v843_v21 = vmul.f32 %v1237_v56, %v842_v19 }
 0x50a   :  { %v847_v22 = vrot.slane %v838_v20, %v1388_v5 }
 0x50c   :  { %v848_v23 = vadd.f32 %v847_v22, %v843_v21 }
 0x50e   :  { %v849_v24 = vmax.f32 %v848_v23, 0.0 }
 0x510   :  { %1297 = vmatmul.mubr.msk.f32.vlgmr.msra.gmra.mxu1 %vm858_vm4, %v849_v24 }
 0x511   :  { %1301 = vmatprep.mubr.msk.f32.mxu1 %vm1335_vm1, %v1334_v0 }
 0x5d0   :  { %v928_v25 = vpop.f32.mrf.mxu1 }
 0x5d1   :  { %v1005_v26 = vmul.f32 %v928_v25, %v928_v25  ;;  %1300 = vmatpush3.msra.mxu1 %v928_v25 }
 0x5d2   :  { %v1298_v27 = vpop.f32.mrf.mxu1  ;;  %1302 = vmatmul.mubr.msk.f32.vlgmr.msra.gmra.mxu1 %vm26_vm0, %v1336_v2  ;;  %1304 = vmatprep.subr.mxu1 %v1334_v0 }
 0x5d3   :  { %1305 = vmatpush3.msra.mxu1 %v1005_v26  ;;  %1306 = vmatprep.mubr.msk.f32.mxu1 %vm1335_vm1, %v1334_v0  ;;  %v933_v0 = vld [vmem:[%s1637_s1 + $0x7] ss:$0 sm:$0xff] }
 0x5d6   :  { %1307 = vmatmul.mubr.msk.f32.vlgmr.msra.gmra.mxu1 %vm26_vm0, %v1336_v2  ;;  %v1097_v2 = vld [vmem:[%s1640_s5] sm:$0xff] }
 0x5d7   :  { %1316 = vmatpush3.msra.mxu0 %v1097_v2 }
 0x692   :  { %v1000_v32 = vpop.f32.mrf.mxu1 }
 0x693   :  { %v1004_v34 = vmul.f32 0.125, %v1000_v32 }
 0x694   :  { %v1303_v35 = vpop.f32.mrf.mxu1 }
 0x695   :  { %v1077_v37 = vmul.f32 %v1004_v34, %v1004_v34 }
 0x696   :  { %v1072_v36 = vpop.f32.mrf.mxu1 }
 0x697   :  { %v1076_v38 = vmul.f32 0.125, %v1072_v36 }
 0x698   :  { %v1308_v39 = vpop.f32.mrf.mxu1 }
 0x699   :  { %v1078_v40 = vsub.f32 %v1076_v38, %v1077_v37 }
 0x69b   :  { %v1079_v41 = vmax.f32 %v1078_v40, 0.0 }
 0x69d   :  { %v1080_v42 = vadd.f32 1e-05, %v1079_v41 }
 0x69f   :  { %1332 = vrsqrt.f32 %v1080_v42 }
 0x6ac   :  { %v1333_v44 = vpop.eup %1332 }
 0x6ad   :  { %v1082_v45 = vmul.f32 %v1333_v44, %v932_v43 }
 0x6af   :  { %v1083_v46 = vmul.f32 %v1082_v45, %v1004_v34  ;;  %v1088_v47 = vrot.slane %v1082_v45, %v1388_v5 }
 0x6b1   :  { %v1084_v48 = vsub.f32 %v933_v0, %v1083_v46  ;;  %v1089_v49 = vmul.f32 %v1088_v47, %v928_v25 }
 0x6b3   :  { %v1093_v4 = vrot.slane %v1084_v48, %v1388_v5 }
 0x6b5   :  { %v1094_v50 = vadd.f32 %v1093_v4, %v1089_v49 }
 0x6b7   :  { %v1095_v51 = vmax.f32 %v1094_v50, 0.0 }
 0x6b9   :  { %1318 = vmatmul.mubr.msk.f32.vlgmr.msra.gmra.mxu0 %vm1101_vm5, %v1095_v51 }
 0x779   :  { %v1171_v53 = vpop.f32.mrf.mxu0 }
 0x77a   :  { %v1172_v54 = vadd.f32 %v1171_v53, %v1096_v52 }
 0x77b   :  { %v1319_v55 = vpop.f32.mrf.mxu0 }
 0x77c   :  { %1176 = vst.msk [vmem:[%s1641_s6] sm:$0xff] %vm1175_vm6, %v1172_v54 }

</bundles_post_ra>
